<compile_context>
chip_gen: v6e
topology: v6e:2x2x1
jax: 0.10.0
libtpu: 0.0.40
codegen_flags: <defaults>
</compile_context>

<pallas_src>
import functools

import jax
import jax.numpy as jnp
from jax.experimental import pallas as pl
from jax.experimental.pallas import tpu as pltpu


# ---------------------------------------------------------------------------
# Kernel 1: conv_reduce(1x1)+BN+ReLU  ->  grouped 3x3 (stride s)+BN+ReLU
#           One grid step per image; padded intermediate lives in VMEM only.
# ---------------------------------------------------------------------------
def _reduce_conv3x3_kernel(x_ref, wr_ref, br_ref, w9_ref, bc_ref, o_ref, tpad_ref,
                           *, H, W, Cin, D, Ho, Wo, stride):
    # ---- 1x1 reduce + folded-BN bias + ReLU (MXU, f32 accumulation) ----
    x2d = x_ref[...].reshape(H * W, Cin)
    t = jnp.dot(x2d, wr_ref[...], preferred_element_type=jnp.float32) + br_ref[...]
    t = jnp.maximum(t, 0.0)

    # ---- zero-pad in VMEM scratch (no HBM round trip for the pad) ----
    tpad_ref[...] = jnp.zeros_like(tpad_ref)
    tpad_ref[1:H + 1, 1:W + 1, :] = t.reshape(H, W, D)

    # ---- im2col: 9 taps, strided reads, single K = 9*D matmul ----
    taps = []
    for dy in range(3):
        for dx in range(3):
            if stride == 1:
                tap = tpad_ref[dy:dy + Ho, dx:dx + Wo, :]
            else:
                tap = tpad_ref[pl.ds(dy, Ho, stride=stride),
                               pl.ds(dx, Wo, stride=stride), :]
            taps.append(tap.reshape(Ho * Wo, D))
    cols = jnp.concatenate(taps, axis=1).astype(w9_ref.dtype)      # (Ho*Wo, 9*D)

    acc = jnp.dot(cols, w9_ref[...], preferred_element_type=jnp.float32) + bc_ref[...]
    acc = jnp.maximum(acc, 0.0)
    o_ref[...] = acc.reshape(1, Ho, Wo, D).astype(o_ref.dtype)


def fused_reduce_conv3x3(x_nhwc, w_reduce, b_reduce, w_conv9, b_conv, *, stride):
    N, H, W, Cin = x_nhwc.shape
    D = w_reduce.shape[1]
    Ho = (H - 1) // stride + 1
    Wo = (W - 1) // stride + 1
    kernel = functools.partial(_reduce_conv3x3_kernel, H=H, W=W, Cin=Cin, D=D,
                               Ho=Ho, Wo=Wo, stride=stride)
    return pl.pallas_call(
        kernel,
        out_shape=jax.ShapeDtypeStruct((N, Ho, Wo, D), x_nhwc.dtype),
        grid=(N,),
        in_specs=[
            pl.BlockSpec((1, H, W, Cin), lambda n: (n, 0, 0, 0)),
            pl.BlockSpec((Cin, D), lambda n: (0, 0)),
            pl.BlockSpec((1, D), lambda n: (0, 0)),
            pl.BlockSpec((9 * D, D), lambda n: (0, 0)),
            pl.BlockSpec((1, D), lambda n: (0, 0)),
        ],
        out_specs=pl.BlockSpec((1, Ho, Wo, D), lambda n: (n, 0, 0, 0)),
        scratch_shapes=[pltpu.VMEM((H + 2, W + 2, D), jnp.float32)],
        compiler_params=pltpu.CompilerParams(dimension_semantics=("parallel",)),
    )(x_nhwc, w_reduce, b_reduce, w_conv9, b_conv)


# ---------------------------------------------------------------------------
# Kernel 2: conv_expand(1x1)+BN  +  shortcut(1x1 conv+BN or identity)
#           + residual add + final ReLU, all in one epilogue.
# ---------------------------------------------------------------------------
def _expand_add_relu_kernel(t_ref, xs_ref, we_ref, be_ref, *rest, projection):
    if projection:
        ws_ref, bs_ref, o_ref = rest
    else:
        (o_ref,) = rest
    tr, Wo, D = t_ref.shape
    Cout = we_ref.shape[1]

    t2 = t_ref[...].reshape(tr * Wo, D)
    acc = jnp.dot(t2, we_ref[...], preferred_element_type=jnp.float32) + be_ref[...]

    xs2 = xs_ref[...].reshape(tr * Wo, xs_ref.shape[2])
    if projection:
        acc = acc + jnp.dot(xs2, ws_ref[...], preferred_element_type=jnp.float32)
        acc = acc + bs_ref[...]
    else:
        acc = acc + xs2.astype(jnp.float32)

    acc = jnp.maximum(acc, 0.0)
    o_ref[...] = acc.reshape(tr, Wo, Cout).astype(o_ref.dtype)


def _pick_row_tile(rows, wo):
    # Target ~512 spatial positions per block (HBM-bound sweet spot) while
    # keeping >=2 parallel grid steps when possible (v7x has 2 TensorCores).
    target = max(1, 512 // max(wo, 1))
    cap = rows // 2 if rows >= 2 else rows
    cap = max(1, min(target, cap))
    for tr in range(cap, 0, -1):
        if rows % tr == 0:
            return tr
    return 1


def fused_expand_add_relu(t, xs, w_expand, b_expand, w_short=None, b_short=None):
    R, Wo, D = t.shape
    Cs = xs.shape[2]
    Cout = w_expand.shape[1]
    projection = w_short is not None
    tr = _pick_row_tile(R, Wo)
    kernel = functools.partial(_expand_add_relu_kernel, projection=projection)

    in_specs = [
        pl.BlockSpec((tr, Wo, D), lambda i: (i, 0, 0)),
        pl.BlockSpec((tr, Wo, Cs), lambda i: (i, 0, 0)),
        pl.BlockSpec((D, Cout), lambda i: (0, 0)),
        pl.BlockSpec((1, Cout), lambda i: (0, 0)),
    ]
    args = [t, xs, w_expand, b_expand]
    if projection:
        in_specs += [pl.BlockSpec((Cs, Cout), lambda i: (0, 0)),
                     pl.BlockSpec((1, Cout), lambda i: (0, 0))]
        args += [w_short, b_short]

    return pl.pallas_call(
        kernel,
        out_shape=jax.ShapeDtypeStruct((R, Wo, Cout), jnp.float32),
        grid=(R // tr,),
        in_specs=in_specs,
        out_specs=pl.BlockSpec((tr, Wo, Cout), lambda i: (i, 0, 0)),
        compiler_params=pltpu.CompilerParams(dimension_semantics=("parallel",)),
    )(*args)


# ---------------------------------------------------------------------------
# Parameter construction (deterministic, synthetic) with BN scale folding
# ---------------------------------------------------------------------------
def _bn_fold(channels, eps=1e-5):
    # fresh-init BN: gamma=1, beta=0, running_mean=0, running_var=1
    gamma = jnp.ones((channels,), jnp.float32)
    beta = jnp.zeros((channels,), jnp.float32)
    mean = jnp.zeros((channels,), jnp.float32)
    var = jnp.ones((channels,), jnp.float32)
    scale = gamma / jnp.sqrt(var + eps)
    bias = beta - mean * scale
    return scale, bias


def init_params(key, in_channels, out_channels, cardinality, base_width,
                widen_factor, dtype=jnp.bfloat16):
    width_ratio = out_channels / (widen_factor * 64.0)
    D = cardinality * int(base_width * width_ratio)
    ks = jax.random.split(key, 4)
    p = {"D": D}

    # conv_reduce: (Cin, D) with BN scale folded into the output channels.
    s, b = _bn_fold(D)
    w_red = jax.random.normal(ks[0], (in_channels, D), jnp.float32) * 0.05
    p["w_reduce"] = (w_red * s[None, :]).astype(dtype)
    p["b_reduce"] = b[None, :]

    # conv_conv: grouped 3x3 expressed as block-diagonal dense HWIO weight,
    # reshaped to (9*D, D) tap-major to match the in-kernel im2col order.
    gpc = D // cardinality
    w_g = jax.random.normal(ks[1], (D, gpc, 3, 3), jnp.float32) * 0.05
    w_dense = jnp.zeros((3, 3, D, D), jnp.float32)
    for g in range(cardinality):
        sl = slice(g * gpc, (g + 1) * gpc)
        w_dense = w_dense.at[:, :, sl, sl].set(jnp.transpose(w_g[sl], (2, 3, 1, 0)))
    s, b = _bn_fold(D)
    w_dense = w_dense * s[None, None, None, :]
    p["w_conv9"] = w_dense.reshape(9 * D, D).astype(dtype)
    p["b_conv"] = b[None, :]

    # conv_expand: (D, Cout) with bn_expand folded.
    s, b = _bn_fold(out_channels)
    w_exp = jax.random.normal(ks[2], (D, out_channels), jnp.float32) * 0.05
    p["w_expand"] = (w_exp * s[None, :]).astype(dtype)
    p["b_expand"] = b[None, :]

    if in_channels != out_channels:
        s, b = _bn_fold(out_channels)
        w_sc = jax.random.normal(ks[3], (in_channels, out_channels), jnp.float32) * 0.05
        p["w_shortcut"] = (w_sc * s[None, :]).astype(dtype)
        p["b_shortcut"] = b[None, :]
    return p


# ---------------------------------------------------------------------------
# Forward (NCHW in / NCHW out, matching the PyTorch module)
# ---------------------------------------------------------------------------
def resnext_bottleneck_forward(x_nchw, p, *, stride, in_channels, out_channels):
    x = jnp.transpose(x_nchw, (0, 2, 3, 1)).astype(jnp.bfloat16)   # NHWC, bf16
    N, H, W, Cin = x.shape
    D = p["D"]

    # reduce + 3x3 (grouped, strided) fused in one kernel -> (N, Ho, Wo, D)
    t = fused_reduce_conv3x3(x, p["w_reduce"], p["b_reduce"],
                             p["w_conv9"], p["b_conv"], stride=stride)
    Ho, Wo = t.shape[1], t.shape[2]

    # shortcut input: 1x1 stride-s conv == subsample then matmul; the identity
    # shortcut also requires the spatial subsample (bug fix vs. previous ver).
    xs = x[:, ::stride, ::stride, :]

    t2 = t.reshape(N * Ho, Wo, D)
    xs2 = xs.reshape(N * Ho, Wo, Cin)
    if in_channels != out_channels:
        out = fused_expand_add_relu(t2, xs2, p["w_expand"], p["b_expand"],
                                    p["w_shortcut"], p["b_shortcut"])
    else:
        out = fused_expand_add_relu(t2, xs2, p["w_expand"], p["b_expand"])

    out = out.reshape(N, Ho, Wo, out_channels)
    return jnp.transpose(out, (0, 3, 1, 2)).astype(jnp.float32)    # NCHW


if __name__ == "__main__":
    in_channels, out_channels = 8, 64
    stride, cardinality, base_width, widen_factor = 2, 4, 4, 1      # -> D = 16

    key = jax.random.PRNGKey(0)
    kx, kp = jax.random.split(key)
    x = jax.random.normal(kx, (2, in_channels, 16, 16), jnp.float32)   # NCHW
    params = init_params(kp, in_channels, out_channels, cardinality,
                         base_width, widen_factor)

    out = resnext_bottleneck_forward(x, params, stride=stride,
                                     in_channels=in_channels,
                                     out_channels=out_channels)
    out = jax.block_until_ready(out)
    assert out.shape == (2, out_channels, 8, 8), out.shape
    assert bool(jnp.all(out >= 0.0))          # final ReLU
    assert bool(jnp.all(jnp.isfinite(out)))
    print("KERNEL_OK")
</pallas_src>

<mosaic_0001>
module attributes {stable_mosaic.version = 11 : i64} {
  func.func @_reduce_conv3x3_kernel(%arg0: i32, %arg1: memref<1x16x16x8xbf16, #tpu.memory_space<vmem>>, %arg2: memref<8x16xbf16, #tpu.memory_space<vmem>>, %arg3: memref<1x16xf32, #tpu.memory_space<vmem>>, %arg4: memref<144x16xbf16, #tpu.memory_space<vmem>>, %arg5: memref<1x16xf32, #tpu.memory_space<vmem>>, %arg6: memref<1x8x8x16xbf16, #tpu.memory_space<vmem>>, %arg7: memref<18x18x16xf32, #tpu.memory_space<vmem>>) attributes {dimension_semantics = [#tpu.dimension_semantics<parallel>], iteration_bounds = array<i64: 2>, scalar_prefetch = 0 : i64, scratch_operands = 1 : i64, tpu.core_type = #tpu.core_type<tc>, window_params = [{transform_indices = @transform_0, window_bounds = array<i64: 1, 16, 16, 8>}, {pipeline_mode = #tpu.pipeline_mode<synchronous>, transform_indices = @transform_1, window_bounds = array<i64: 8, 16>}, {pipeline_mode = #tpu.pipeline_mode<synchronous>, transform_indices = @transform_2, window_bounds = array<i64: 1, 16>}, {pipeline_mode = #tpu.pipeline_mode<synchronous>, transform_indices = @transform_3, window_bounds = array<i64: 144, 16>}, {pipeline_mode = #tpu.pipeline_mode<synchronous>, transform_indices = @transform_4, window_bounds = array<i64: 1, 16>}, {transform_indices = @transform_5, window_bounds = array<i64: 1, 8, 8, 16>}]} {
    %c0 = arith.constant 0 : index
    %c0_0 = arith.constant 0 : index
    %c0_1 = arith.constant 0 : index
    %c0_2 = arith.constant 0 : index
    %0 = vector.load %arg1[%c0, %c0_0, %c0_1, %c0_2] : memref<1x16x16x8xbf16, #tpu.memory_space<vmem>>, vector<1x16x16x8xbf16>
    %1 = vector.shape_cast %0 : vector<1x16x16x8xbf16> to vector<256x8xbf16>
    %c0_3 = arith.constant 0 : index
    %c0_4 = arith.constant 0 : index
    %2 = vector.load %arg2[%c0_3, %c0_4] : memref<8x16xbf16, #tpu.memory_space<vmem>>, vector<8x16xbf16>
    %cst = arith.constant dense<0.000000e+00> : vector<256x16xf32>
    %3 = tpu.matmul %1, %2, %cst {dimension_numbers = #tpu.dot_dimension_numbers<[1], [0], [0], [1], [0, 0, 1, 1], [], []>} : vector<256x8xbf16>, vector<8x16xbf16>, vector<256x16xf32> -> vector<256x16xf32>
    %c0_5 = arith.constant 0 : index
    %c0_6 = arith.constant 0 : index
    %4 = vector.load %arg3[%c0_5, %c0_6] : memref<1x16xf32, #tpu.memory_space<vmem>>, vector<1x16xf32>
    %5 = vector.broadcast %4 : vector<1x16xf32> to vector<256x16xf32>
    %6 = arith.addf %3, %5 : vector<256x16xf32>
    %cst_7 = arith.constant 0.000000e+00 : f32
    %7 = vector.broadcast %cst_7 : f32 to vector<256x16xf32>
    %8 = arith.maximumf %6, %7 : vector<256x16xf32>
    %cst_8 = arith.constant 0.000000e+00 : f32
    %9 = vector.broadcast %cst_8 : f32 to vector<18x18x16xf32>
    %c0_9 = arith.constant 0 : index
    %c0_10 = arith.constant 0 : index
    %c0_11 = arith.constant 0 : index
    %10 = vector.load %arg7[%c0_9, %c0_10, %c0_11] : memref<18x18x16xf32, #tpu.memory_space<vmem>>, vector<18x18x16xf32>
    tpu.vector_store %arg7[%c0_9, %c0_10, %c0_11], %9 {strides = array<i32>} : memref<18x18x16xf32, #tpu.memory_space<vmem>>, vector<18x18x16xf32>,
    %11 = vector.shape_cast %8 : vector<256x16xf32> to vector<16x16x16xf32>
    %c1 = arith.constant 1 : index
    %c1_12 = arith.constant 1 : index
    %c0_13 = arith.constant 0 : index
    %12 = vector.load %arg7[%c1, %c1_12, %c0_13] : memref<18x18x16xf32, #tpu.memory_space<vmem>>, vector<16x16x16xf32>
    tpu.vector_store %arg7[%c1, %c1_12, %c0_13], %11 {strides = array<i32>} : memref<18x18x16xf32, #tpu.memory_space<vmem>>, vector<16x16x16xf32>,
    %c0_14 = arith.constant 0 : index
    %c0_15 = arith.constant 0 : index
    %c0_16 = arith.constant 0 : index
    %13 = tpu.strided_load %arg7[%c0_14, %c0_15, %c0_16] {strides = array<i32: 2, 2, 1>} : memref<18x18x16xf32, #tpu.memory_space<vmem>>, vector<8x8x16xf32>
    %14 = vector.shape_cast %13 : vector<8x8x16xf32> to vector<64x16xf32>
    %c0_17 = arith.constant 0 : index
    %c1_18 = arith.constant 1 : index
    %c0_19 = arith.constant 0 : index
    %15 = tpu.strided_load %arg7[%c0_17, %c1_18, %c0_19] {strides = array<i32: 2, 2, 1>} : memref<18x18x16xf32, #tpu.memory_space<vmem>>, vector<8x8x16xf32>
    %16 = vector.shape_cast %15 : vector<8x8x16xf32> to vector<64x16xf32>
    %c0_20 = arith.constant 0 : index
    %c2 = arith.constant 2 : index
    %c0_21 = arith.constant 0 : index
    %17 = tpu.strided_load %arg7[%c0_20, %c2, %c0_21] {strides = array<i32: 2, 2, 1>} : memref<18x18x16xf32, #tpu.memory_space<vmem>>, vector<8x8x16xf32>
    %18 = vector.shape_cast %17 : vector<8x8x16xf32> to vector<64x16xf32>
    %c1_22 = arith.constant 1 : index
    %c0_23 = arith.constant 0 : index
    %c0_24 = arith.constant 0 : index
    %19 = tpu.strided_load %arg7[%c1_22, %c0_23, %c0_24] {strides = array<i32: 2, 2, 1>} : memref<18x18x16xf32, #tpu.memory_space<vmem>>, vector<8x8x16xf32>
    %20 = vector.shape_cast %19 : vector<8x8x16xf32> to vector<64x16xf32>
    %c1_25 = arith.constant 1 : index
    %c1_26 = arith.constant 1 : index
    %c0_27 = arith.constant 0 : index
    %21 = tpu.strided_load %arg7[%c1_25, %c1_26, %c0_27] {strides = array<i32: 2, 2, 1>} : memref<18x18x16xf32, #tpu.memory_space<vmem>>, vector<8x8x16xf32>
    %22 = vector.shape_cast %21 : vector<8x8x16xf32> to vector<64x16xf32>
    %c1_28 = arith.constant 1 : index
    %c2_29 = arith.constant 2 : index
    %c0_30 = arith.constant 0 : index
    %23 = tpu.strided_load %arg7[%c1_28, %c2_29, %c0_30] {strides = array<i32: 2, 2, 1>} : memref<18x18x16xf32, #tpu.memory_space<vmem>>, vector<8x8x16xf32>
    %24 = vector.shape_cast %23 : vector<8x8x16xf32> to vector<64x16xf32>
    %c2_31 = arith.constant 2 : index
    %c0_32 = arith.constant 0 : index
    %c0_33 = arith.constant 0 : index
    %25 = tpu.strided_load %arg7[%c2_31, %c0_32, %c0_33] {strides = array<i32: 2, 2, 1>} : memref<18x18x16xf32, #tpu.memory_space<vmem>>, vector<8x8x16xf32>
    %26 = vector.shape_cast %25 : vector<8x8x16xf32> to vector<64x16xf32>
    %c2_34 = arith.constant 2 : index
    %c1_35 = arith.constant 1 : index
    %c0_36 = arith.constant 0 : index
    %27 = tpu.strided_load %arg7[%c2_34, %c1_35, %c0_36] {strides = array<i32: 2, 2, 1>} : memref<18x18x16xf32, #tpu.memory_space<vmem>>, vector<8x8x16xf32>
    %28 = vector.shape_cast %27 : vector<8x8x16xf32> to vector<64x16xf32>
    %c2_37 = arith.constant 2 : index
    %c2_38 = arith.constant 2 : index
    %c0_39 = arith.constant 0 : index
    %29 = tpu.strided_load %arg7[%c2_37, %c2_38, %c0_39] {strides = array<i32: 2, 2, 1>} : memref<18x18x16xf32, #tpu.memory_space<vmem>>, vector<8x8x16xf32>
    %30 = vector.shape_cast %29 : vector<8x8x16xf32> to vector<64x16xf32>
    %31 = tpu.concatenate %14, %16, %18, %20, %22, %24, %26, %28, %30 in 1 : vector<64x16xf32>, vector<64x16xf32>, vector<64x16xf32>, vector<64x16xf32>, vector<64x16xf32>, vector<64x16xf32>, vector<64x16xf32>, vector<64x16xf32>, vector<64x16xf32> -> vector<64x144xf32>
    %32 = arith.truncf %31 : vector<64x144xf32> to vector<64x144xbf16>
    %c0_40 = arith.constant 0 : index
    %c0_41 = arith.constant 0 : index
    %33 = vector.load %arg4[%c0_40, %c0_41] : memref<144x16xbf16, #tpu.memory_space<vmem>>, vector<144x16xbf16>
    %cst_42 = arith.constant dense<0.000000e+00> : vector<64x16xf32>
    %34 = tpu.matmul %32, %33, %cst_42 {dimension_numbers = #tpu.dot_dimension_numbers<[1], [0], [0], [1], [0, 0, 1, 1], [], []>} : vector<64x144xbf16>, vector<144x16xbf16>, vector<64x16xf32> -> vector<64x16xf32>
    %c0_43 = arith.constant 0 : index
    %c0_44 = arith.constant 0 : index
    %35 = vector.load %arg5[%c0_43, %c0_44] : memref<1x16xf32, #tpu.memory_space<vmem>>, vector<1x16xf32>
    %36 = vector.broadcast %35 : vector<1x16xf32> to vector<64x16xf32>
    %37 = arith.addf %34, %36 : vector<64x16xf32>
    %cst_45 = arith.constant 0.000000e+00 : f32
    %38 = vector.broadcast %cst_45 : f32 to vector<64x16xf32>
    %39 = arith.maximumf %37, %38 : vector<64x16xf32>
    %40 = vector.shape_cast %39 : vector<64x16xf32> to vector<1x8x8x16xf32>
    %41 = arith.truncf %40 : vector<1x8x8x16xf32> to vector<1x8x8x16xbf16>
    %c0_46 = arith.constant 0 : index
    %c0_47 = arith.constant 0 : index
    %c0_48 = arith.constant 0 : index
    %c0_49 = arith.constant 0 : index
    %42 = vector.load %arg6[%c0_46, %c0_47, %c0_48, %c0_49] : memref<1x8x8x16xbf16, #tpu.memory_space<vmem>>, vector<1x8x8x16xbf16>
    tpu.vector_store %arg6[%c0_46, %c0_47, %c0_48, %c0_49], %41 {strides = array<i32>} : memref<1x8x8x16xbf16, #tpu.memory_space<vmem>>, vector<1x8x8x16xbf16>,
    return
  }
  func.func @transform_0(%arg0: i32) -> (i32, i32, i32, i32) {
    %c0_i32 = arith.constant 0 : i32
    %c0_i32_0 = arith.constant 0 : i32
    %c0_i32_1 = arith.constant 0 : i32
    %c0_i32_2 = arith.constant 0 : i32
    return %arg0, %c0_i32, %c0_i32_0, %c0_i32_1 : i32, i32, i32, i32
  }
  func.func @transform_1(%arg0: i32) -> (i32, i32) {
    %c0_i32 = arith.constant 0 : i32
    %c0_i32_0 = arith.constant 0 : i32
    %c0_i32_1 = arith.constant 0 : i32
    return %c0_i32, %c0_i32_0 : i32, i32
  }
  func.func @transform_2(%arg0: i32) -> (i32, i32) {
    %c0_i32 = arith.constant 0 : i32
    %c0_i32_0 = arith.constant 0 : i32
    %c0_i32_1 = arith.constant 0 : i32
    return %c0_i32, %c0_i32_0 : i32, i32
  }
  func.func @transform_3(%arg0: i32) -> (i32, i32) {
    %c0_i32 = arith.constant 0 : i32
    %c0_i32_0 = arith.constant 0 : i32
    %c0_i32_1 = arith.constant 0 : i32
    return %c0_i32, %c0_i32_0 : i32, i32
  }
  func.func @transform_4(%arg0: i32) -> (i32, i32) {
    %c0_i32 = arith.constant 0 : i32
    %c0_i32_0 = arith.constant 0 : i32
    %c0_i32_1 = arith.constant 0 : i32
    return %c0_i32, %c0_i32_0 : i32, i32
  }
  func.func @transform_5(%arg0: i32) -> (i32, i32, i32, i32) {
    %c0_i32 = arith.constant 0 : i32
    %c0_i32_0 = arith.constant 0 : i32
    %c0_i32_1 = arith.constant 0 : i32
    %c0_i32_2 = arith.constant 0 : i32
    return %arg0, %c0_i32, %c0_i32_0, %c0_i32_1 : i32, i32, i32, i32
  }
}

</mosaic_0001>

<bundles_post_ra>
// kernel: tpu_custom_call.1
= control target key start
LH: loop header
LB: loop body
LE: loop exit
PB: predicated region body
PF: predicated region fallthrough
CT: control target
= control target key end

     0   :  { %10 = vsyncpa [#allocation4], 0  ;;  %s2259_s0 = inlined_call_operand.vmem [shape: bf16[2,16,16,8], index: 0, kind: input, shape index: {}]   ;;  %s2260_s1 = inlined_call_operand.vmem [shape: bf16[8,16], index: 1, kind: input, shape index: {}]   ;;  %s2261_s2 = inlined_call_operand.vmem [shape: f32[1,16], index: 2, kind: input, shape index: {}]   ;;  %s2262_s3 = inlined_call_operand.vmem [shape: bf16[144,16], index: 3, kind: input, shape index: {}]   ;;  %s2263_s4 = inlined_call_operand.vmem [shape: f32[1,16], index: 4, kind: input, shape index: {}]   ;;  %s2264_s5 = inlined_call_operand.hbm [shape: bf16[2,8,8,16], index: 5, kind: output, shape index: {}]  }
   0x1   :  { %12 = vsyncpa [#allocation4 + $0x1], 0  ;;  %s1848_s18 = smov 0   ;;  %s1850_s19 = smov 0  }
   0x2   :  { %s1852_s20 = smov 0   ;;  %s1854_s21 = smov 0  }
   0x3 LB: > { %s1869_s22 = sadd.s32 4294967295, %s1805_s21   ;;  %s1418_s23 = sadd.s32 4294967294, %s1805_s21   ;;  %s1805_s21 = sphi %s1854_s21, %s2270_s21   ;;  %s1801_s20 = sphi %s1852_s20, %s2269_s20   ;;  %s1797_s19 = sphi %s1850_s19, %s2268_s19   ;;  %s1793_s18 = sphi %s1848_s18, %s2267_s18  }
   0x4   : > { %s1873_s24 = sadd.s32 1, %s1805_s21   ;;  %s135_s25 = sadd.s32 1, %s1801_s20 }
   0x5   : > { %s132_s26 = ssub.s32 %s1805_s21, %s1873_s24  ;;  %p145_p0 = scmp.ne.s32.totalorder %s1801_s20, %s1797_s19 }
   0x6   : > { %p133_p1 = scmp.eq.s32.totalorder %s132_s26, 0  ;;  %p146_p2 = scmp.eq.s32.totalorder %s1869_s22, 1 }
   0x7   : > { %p151_p3 = scmp.ne.s32.totalorder %s1797_s19, %s1793_s18  ;;  %p152_p4 = scmp.eq.s32.totalorder %s1418_s23, 1 }
   0x8   : > { %s1884_s27 = scalar_select %p133_p1, %s1801_s20, %s135_s25  }
   0x9   : > { %p1886_p5 = por %p146_p2, %p145_p0  ;;  %p1890_p6 = por %p152_p4, %p151_p3 }
   0xa   : > { %p1421_p7 = scmp.ge.s32.totalorder %s1805_s21, 1  ;;  %p190_p8 = scmp.lt.s32.totalorder %s1805_s21, 3 }
   0xc   : > { %p191_p9 = pnand %p1421_p7, %p190_p8 }
   0xd   : > { %p218_p10 = scmp.lt.s32.totalorder (!%p191_p9), %s1869_s22, 1  ;;  %s1809_s10 = smov (!%p191_p9), 16  }
   0xe   : > { %194 = sbr.rel (%p191_p9) target bundleno = 639 (0x27f), region = 40  ;;  %s1810_s13 = smov (!%p191_p9), 32  }
   0xf   : > { %s1811_s16 = smov (!%p191_p9), 112   ;;  %s1812_s17 = smov (!%p191_p9), 96  }
  0x10   : > { %s1813_s26 = smov (!%p191_p9), 80   ;;  %s1814_s30 = smov (!%p191_p9), 48  }
  0x11   : > { %s1815_s6 = smov (!%p191_p9), 64   ;;  %s1478_s12 = sshll.u32 (!%p191_p9), %s1869_s22, 9 }
  0x12   : > { %s1816_s23 = smov (!%p191_p9), [#allocation3]  }
  0x13   : > { %v256_v0 = vld [vmem:[%s2260_s1] sm:$0xf]  ;;  %vm393_vm0 = vcmask 1043456   ;;  %s219_s7 = scalar_select %p218_p10, %s1869_s22, 1  ;;  %vm344_vm1 = vcmask 64512   ;;  %vm590_vm2 = vcmask 130048  }
  0x14   : > { %1530 = vmatprep.subr.msk.bf16.mxu0 %vm393_vm0, %v256_v0  ;;  %v395_v1 = vsel %vm393_vm0, %v256_v0, 0  ;;  %v1807_v18 = vmov 0.0   ;;  %vm593_vm3 = vcmask 123904   ;;  %v1736_v19 = vld [vmem:[%s2262_s3 + $0x38] sm:$0xff]   ;;  %v1808_v20 = vmov 0   ;;  %v1737_v21 = vld [vmem:[%s2262_s3 + $0x30] sm:$0xff]  }
  0x15   : > { %1497 = vmatpush3.bf16.msra.mxu0 %v395_v1  ;;  %s1477_s8 = sshll.u32 %s219_s7, 7  ;;  %598 = vst.msk [vmem:[#allocation2 + $0x30] sm:$0xff] %vm590_vm2, %v1807_v18  ;;  %599 = vst.msk [vmem:[#allocation2 + $0x38] sm:$0xff] %vm590_vm2, %v1807_v18  ;;  %1206 = vmatprep.subr.bf16.mxu1 %v1808_v20  ;;  %v1738_v22 = vld [vmem:[%s2262_s3 + $0x28] sm:$0xff]   ;;  %v2005_v23 = vld [vmem:[%s2261_s2] ss:$0 sm:$0xff] }
  0x16   : > { %s1904_s11 = scalar_lea.vmem %s2259_s0, %s1477_s8  ;;  %591 = vst.msk [vmem:[#allocation2] sm:$0xff] %vm590_vm2, %v1807_v18  ;;  %592 = vst.msk [vmem:[#allocation2 + $0x8] sm:$0xff] %vm590_vm2, %v1807_v18  ;;  %1207 = vmatpush1.bf16.msra.mxu1 %v1736_v19  ;;  %v1739_v36 = vld [vmem:[%s2262_s3 + $0x20] sm:$0xff]   ;;  %v1740_v43 = vld [vmem:[%s2262_s3 + $0x18] sm:$0xff]   ;;  %vm1053_vm4 = vcmask 261120   ;;  %vm1062_vm5 = vcmask 392192  }
  0x17   : > { %v1720_v2 = vld [vmem:[%s1904_s11] sm:$0xff]   ;;  %v1721_v3 = vld [vmem:[%s1904_s11 + $0x8] sm:$0xff]   ;;  %v1722_v4 = vld [vmem:[%s1904_s11 + $0x10] sm:$0xff]   ;;  %595 = vst.msk [vmem:[#allocation2 + $0x18] sm:$0xff] %vm590_vm2, %v1807_v18  ;;  %1208 = vmatprep.subr.bf16.mxu1 %v1808_v20  ;;  %vm1071_vm6 = vcmask 523264   ;;  %vm1080_vm7 = vcmask 654336  }
  0x18   : > { %1498 = vmatprep.mubr.msk.bf16.mxu0 %vm344_vm1, %v1720_v2  ;;  %v1723_v5 = vld [vmem:[%s1904_s11 + $0x18] sm:$0xff]   ;;  %v1724_v6 = vld [vmem:[%s1904_s11 + $0x20] sm:$0xff]   ;;  %v1725_v7 = vld [vmem:[%s1904_s11 + $0x28] sm:$0xff]   ;;  %596 = vst.msk [vmem:[#allocation2 + $0x20] sm:$0xff] %vm590_vm2, %v1807_v18  ;;  %vm1089_vm8 = vcmask 785408   ;;  %vm1098_vm9 = vcmask 916480  }
  0x19   : > { %1499 = vmatmul.mubr.msk.bf16.vlgmr.msra.gmra.mxu0 %vm344_vm1, %v1721_v3  ;;  %v1726_v8 = vld [vmem:[%s1904_s11 + $0x30] sm:$0xff]   ;;  %v1727_v9 = vld [vmem:[%s1904_s11 + $0x38] sm:$0xff]   ;;  %v1728_v10 = vld [vmem:[%s1904_s11 + $0x40] sm:$0xff]   ;;  %601 = vst.msk [vmem:[#allocation2 + $0x48] sm:$0xff] %vm590_vm2, %v1807_v18  ;;  %s215_s7 = sand.u32 1, %s1797_s19   ;;  %vm1287_vm10 = vcmask 125952  }
  0x1a   : > { %1502 = vmatprep.mubr.msk.bf16.mxu0 %vm344_vm1, %v1722_v4  ;;  %v1729_v11 = vld [vmem:[%s1904_s11 + $0x48] sm:$0xff]   ;;  %v1730_v12 = vld [vmem:[%s1904_s11 + $0x50] sm:$0xff]   ;;  %v1731_v13 = vld [vmem:[%s1904_s11 + $0x58] sm:$0xff]   ;;  %602 = vst.msk [vmem:[#allocation2 + $0x50] sm:$0xff] %vm590_vm2, %v1807_v18  ;;  %1209 = vmatpush1.bf16.msra.mxu1 %v1737_v21  ;;  %s2217_s22 = scalar_lea.sflag [#allocation4], %s215_s7  ;;  %s1749_s25 = sshll.u32 %s1816_s23, 4  ;;  %s1750_s25 = int_to_ptr.vmem [resolvable:$false] %s1749_s25 }
  0x1b   : > { %v1732_v14 = vld [vmem:[%s1904_s11 + $0x60] sm:$0xff]   ;;  %v1733_v15 = vld [vmem:[%s1904_s11 + $0x68] sm:$0xff]   ;;  %v1734_v16 = vld [vmem:[%s1904_s11 + $0x70] sm:$0xff]   ;;  %604 = vst.msk [vmem:[#allocation2 + $0x60] sm:$0xff] %vm590_vm2, %v1807_v18  ;;  %1210 = vmatprep.subr.bf16.mxu1 %v1808_v20 }
  0x1c   : > { %v1735_v17 = vld [vmem:[%s1904_s11 + $0x78] sm:$0xff]   ;;  %605 = vst.msk [vmem:[#allocation2 + $0x68] sm:$0xff] %vm590_vm2, %v1807_v18  ;;  %607 = vst.msk [vmem:[#allocation2 + $0x78] sm:$0xff] %vm590_vm2, %v1807_v18  ;;  %v1741_v50 = vld [vmem:[%s2262_s3 + $0x10] sm:$0xff]  }
  0x1d   : > { %608 = vst.msk [vmem:[#allocation2 + $0x80] sm:$0xff] %vm590_vm2, %v1807_v18  ;;  %610 = vst.msk [vmem:[#allocation2 + $0x90] sm:$0xff] %vm590_vm2, %v1807_v18  ;;  %v695_v47 = vld [vmem:[#allocation2 + $0x1] ss:$2 sm:$0xff] }
  0x1e   : > { %611 = vst.msk [vmem:[#allocation2 + $0x98] sm:$0xff] %vm590_vm2, %v1807_v18  ;;  %613 = vst.msk [vmem:[#allocation2 + $0xa8] sm:$0xff] %vm590_vm2, %v1807_v18  ;;  %1211 = vmatpush1.bf16.msra.mxu1 %v1738_v22  ;;  %v1742_v62 = vld [vmem:[%s2262_s3 + $0x8] sm:$0xff]  }
  0x1f   : > { %614 = vst.msk [vmem:[#allocation2 + $0xb0] sm:$0xff] %vm590_vm2, %v1807_v18  ;;  %616 = vst.msk [vmem:[#allocation2 + $0xc0] sm:$0xff] %vm590_vm2, %v1807_v18  ;;  %1212 = vmatprep.subr.bf16.mxu1 %v1808_v20 }
  0x20   : > { %617 = vst.msk [vmem:[#allocation2 + $0xc8] sm:$0xff] %vm590_vm2, %v1807_v18  ;;  %619 = vst.msk [vmem:[#allocation2 + $0xd8] sm:$0xff] %vm590_vm2, %v1807_v18 }
  0x21   : > { %1503 = vmatmul.mubr.msk.bf16.gmra.mxu0 %vm344_vm1, %v1723_v5  ;;  %620 = vst.msk [vmem:[#allocation2 + $0xe0] sm:$0xff] %vm590_vm2, %v1807_v18  ;;  %622 = vst.msk [vmem:[#allocation2 + $0xf0] sm:$0xff] %vm590_vm2, %v1807_v18 }
  0x22   : > { %1506 = vmatprep.mubr.msk.bf16.mxu0 %vm344_vm1, %v1724_v6  ;;  %623 = vst.msk [vmem:[#allocation2 + $0xf8] sm:$0xff] %vm590_vm2, %v1807_v18  ;;  %625 = vst.msk [vmem:[#allocation2 + $0x108] sm:$0xff] %vm590_vm2, %v1807_v18  ;;  %1213 = vmatpush1.bf16.msra.mxu1 %v1739_v36 }
  0x23   : > { %626 = vst.msk [vmem:[#allocation2 + $0x110] sm:$0xff] %vm590_vm2, %v1807_v18  ;;  %628 = vst.msk [vmem:[#allocation2 + $0x120] sm:$0xff] %vm590_vm2, %v1807_v18  ;;  %1214 = vmatprep.subr.bf16.mxu1 %v1808_v20 }
  0x24   : > { %629 = vst.msk [vmem:[#allocation2 + $0x128] sm:$0xff] %vm590_vm2, %v1807_v18  ;;  %631 = vst.msk [vmem:[#allocation2 + $0x138] sm:$0xff] %vm590_vm2, %v1807_v18 }
  0x25   : > { %632 = vst.msk [vmem:[#allocation2 + $0x140] sm:$0xff] %vm590_vm2, %v1807_v18  ;;  %634 = vst.msk [vmem:[#allocation2 + $0x150] sm:$0xff] %vm590_vm2, %v1807_v18 }
  0x26   : > { %635 = vst.msk [vmem:[#allocation2 + $0x158] sm:$0xff] %vm590_vm2, %v1807_v18  ;;  %637 = vst.msk [vmem:[#allocation2 + $0x168] sm:$0xff] %vm590_vm2, %v1807_v18  ;;  %1215 = vmatpush1.bf16.msra.mxu1 %v1740_v43 }
  0x27   : > { %638 = vst.msk [vmem:[#allocation2 + $0x170] sm:$0xff] %vm590_vm2, %v1807_v18  ;;  %640 = vst.msk [vmem:[#allocation2 + $0x180] sm:$0xff] %vm590_vm2, %v1807_v18  ;;  %1216 = vmatprep.subr.bf16.mxu1 %v1808_v20 }
  0x28   : > { %641 = vst.msk [vmem:[#allocation2 + $0x188] sm:$0xff] %vm590_vm2, %v1807_v18 }
  0x29   : > { %1507 = vmatmul.mubr.msk.bf16.gmra.mxu0 %vm344_vm1, %v1725_v7  ;;  %600 = vst.msk [vmem:[#allocation2 + $0x40] sm:$0x3] %vm593_vm3, %v1807_v18  ;;  %594 = vst.msk [vmem:[#allocation2 + $0x10] sm:$0x3] %vm593_vm3, %v1807_v18 }
  0x2a   : > { %1510 = vmatprep.mubr.msk.bf16.mxu0 %vm344_vm1, %v1726_v8  ;;  %597 = vst.msk [vmem:[#allocation2 + $0x28] sm:$0x3] %vm593_vm3, %v1807_v18  ;;  %603 = vst.msk [vmem:[#allocation2 + $0x58] sm:$0x3] %vm593_vm3, %v1807_v18  ;;  %1217 = vmatpush1.bf16.msra.mxu1 %v1741_v50 }
  0x2b   : > { %606 = vst.msk [vmem:[#allocation2 + $0x70] sm:$0x3] %vm593_vm3, %v1807_v18  ;;  %609 = vst.msk [vmem:[#allocation2 + $0x88] sm:$0x3] %vm593_vm3, %v1807_v18  ;;  %1218 = vmatprep.subr.bf16.mxu1 %v1808_v20 }
  0x2c   : > { %612 = vst.msk [vmem:[#allocation2 + $0xa0] sm:$0x3] %vm593_vm3, %v1807_v18  ;;  %615 = vst.msk [vmem:[#allocation2 + $0xb8] sm:$0x3] %vm593_vm3, %v1807_v18 }
  0x2d   : > { %618 = vst.msk [vmem:[#allocation2 + $0xd0] sm:$0x3] %vm593_vm3, %v1807_v18  ;;  %621 = vst.msk [vmem:[#allocation2 + $0xe8] sm:$0x3] %vm593_vm3, %v1807_v18 }
  0x2e   : > { %624 = vst.msk [vmem:[#allocation2 + $0x100] sm:$0x3] %vm593_vm3, %v1807_v18  ;;  %627 = vst.msk [vmem:[#allocation2 + $0x118] sm:$0x3] %vm593_vm3, %v1807_v18  ;;  %1219 = vmatpush1.bf16.msra.mxu1 %v1742_v62 }
  0x2f   : > { %630 = vst.msk [vmem:[#allocation2 + $0x130] sm:$0x3] %vm593_vm3, %v1807_v18  ;;  %633 = vst.msk [vmem:[#allocation2 + $0x148] sm:$0x3] %vm593_vm3, %v1807_v18  ;;  %1220 = vmatprep.subr.bf16.mxu1 %v1808_v20 }
  0x30   : > { %636 = vst.msk [vmem:[#allocation2 + $0x160] sm:$0x3] %vm593_vm3, %v1807_v18  ;;  %639 = vst.msk [vmem:[#allocation2 + $0x178] sm:$0x3] %vm593_vm3, %v1807_v18  ;;  %v711_v57 = vld [vmem:[#allocation2 + $0x2] ss:$2 sm:$0xff] }
  0x31   : > { %1511 = vmatmul.mubr.msk.bf16.gmra.mxu0 %vm344_vm1, %v1727_v9  ;;  %642 = vst.msk [vmem:[#allocation2 + $0x190] sm:$0x3] %vm593_vm3, %v1807_v18 }
  0x32   : > { %1514 = vmatprep.mubr.msk.bf16.mxu0 %vm344_vm1, %v1728_v10 }
  0x39   : > { %1515 = vmatmul.mubr.msk.bf16.gmra.mxu0 %vm344_vm1, %v1729_v11 }
  0x3a   : > { %1518 = vmatprep.mubr.msk.bf16.mxu0 %vm344_vm1, %v1730_v12 }
  0x41   : > { %1519 = vmatmul.mubr.msk.bf16.gmra.mxu0 %vm344_vm1, %v1731_v13 }
  0x42   : > { %1522 = vmatprep.mubr.msk.bf16.mxu0 %vm344_vm1, %v1732_v14 }
  0x49   : > { %1523 = vmatmul.mubr.msk.bf16.gmra.mxu0 %vm344_vm1, %v1733_v15 }
  0x4a   : > { %1526 = vmatprep.mubr.msk.bf16.mxu0 %vm344_vm1, %v1734_v16  ;;  %v1743_v16 = vld [vmem:[%s2262_s3] sm:$0xff]  }
  0x4b   : > { %1221 = vmatpush1.bf16.msra.mxu1 %v1743_v16 }
  0x4c   : > { %1236 = vmatprep.subr.bf16.mxu1 %v1808_v20 }
  0x51   : > { %1527 = vmatmul.mubr.msk.bf16.gmra.mxu0 %vm344_vm1, %v1735_v17 }
  0xd9   : > { %v1500_v24 = vpop.f32.mrf.mxu0 }
  0xda   : > { %v440_v25 = vadd.f32 %v1500_v24, %v2005_v23 }
  0xdb   : > { %v431_v26 = vpop.f32.mrf.mxu0 }
  0xdc   : > { %v560_v27 = vmax.f32 %v440_v25, 0.0  ;;  %v432_v28 = vadd.f32 %v2005_v23, %v431_v26 }
  0xdd   : > { %v1501_v29 = vpop.f32.mrf.mxu0 }
  0xde   : > { %649 = vst.msk [vmem:[#allocation2 + $0x31] sm:$0xff] %vm590_vm2, %v560_v27  ;;  %v558_v30 = vmax.f32 %v432_v28, 0.0  ;;  %v443_v31 = vadd.f32 %v1501_v29, %v2005_v23  ;;  %v1744_v27 = vld [vmem:[%s2262_s3 + $0x40] sm:$0xff]  }
  0xdf   : > { %v434_v32 = vpop.f32.mrf.mxu0  ;;  %1237 = vmatpush2.bf16.msra.mxu1 %v1744_v27 }
  0xe0   : > { %647 = vst.msk [vmem:[#allocation2 + $0x19] sm:$0xff] %vm590_vm2, %v558_v30  ;;  %v561_v33 = vmax.f32 %v443_v31, 0.0  ;;  %v435_v34 = vadd.f32 %v2005_v23, %v434_v32 }
  0xe1   : > { %v1504_v35 = vpop.f32.mrf.mxu0 }
  0xe2   : > { %650 = vst.msk [vmem:[#allocation2 + $0x39] sm:$0xff] %vm590_vm2, %v561_v33  ;;  %v559_v37 = vmax.f32 %v435_v34, 0.0  ;;  %v456_v38 = vadd.f32 %v1504_v35, %v2005_v23 }
  0xe3   : > { %v447_v39 = vpop.f32.mrf.mxu0 }
  0xe4   : > { %648 = vst.msk [vmem:[#allocation2 + $0x21] sm:$0xff] %vm590_vm2, %v559_v37  ;;  %v564_v40 = vmax.f32 %v456_v38, 0.0  ;;  %v448_v41 = vadd.f32 %v2005_v23, %v447_v39 }
  0xe5   : > { %v1505_v42 = vpop.f32.mrf.mxu0 }
  0xe6   : > { %653 = vst.msk [vmem:[#allocation2 + $0x61] sm:$0xff] %vm590_vm2, %v564_v40  ;;  %v562_v44 = vmax.f32 %v448_v41, 0.0  ;;  %v459_v45 = vadd.f32 %v1505_v42, %v2005_v23 }
  0xe7   : > { %v450_v46 = vpop.f32.mrf.mxu0 }
  0xe8   : > { %651 = vst.msk [vmem:[#allocation2 + $0x49] sm:$0xff] %vm590_vm2, %v562_v44  ;;  %v565_v48 = vmax.f32 %v459_v45, 0.0  ;;  %v451_v49 = vadd.f32 %v2005_v23, %v450_v46 }
  0xe9   : > { %v1508_v51 = vpop.f32.mrf.mxu0  ;;  %v697_v52 = vld [vmem:[#allocation2 + $0x31] ss:$2 sm:$0xff]  ;;  %v713_v58 = vld [vmem:[#allocation2 + $0x32] ss:$2 sm:$0xff] }
  0xea   : > { %654 = vst.msk [vmem:[#allocation2 + $0x69] sm:$0xff] %vm590_vm2, %v565_v48  ;;  %v563_v53 = vmax.f32 %v451_v49, 0.0  ;;  %v472_v54 = vadd.f32 %v1508_v51, %v2005_v23  ;;  %v1580_v55 = vpack.i.bf16 %v697_v52, %v695_v47  ;;  %v1585_v1 = vpack.i.bf16 %v713_v58, %v711_v57  ;;  %v806_v5 = vld [vmem:[#allocation2 + $0x32] ss:$2 sm:$0xff]  ;;  %v790_v6 = vld [vmem:[#allocation2 + $0x31] ss:$2 sm:$0xff] }
  0xeb   : > { %v463_v56 = vpop.f32.mrf.mxu0  ;;  %v774_v15 = vld [vmem:[#allocation2 + $0x30] ss:$2 sm:$0xff]  ;;  %v742_v42 = vld [vmem:[#allocation2 + $0x19] ss:$2 sm:$0xff] }
  0xec   : > { %652 = vst.msk [vmem:[#allocation2 + $0x51] sm:$0xff] %vm590_vm2, %v563_v53  ;;  %v568_v59 = vmax.f32 %v472_v54, 0.0  ;;  %v464_v60 = vadd.f32 %v2005_v23, %v463_v56  ;;  %1581 = vrot.lane.b32.xlu0 %v1580_v55, %s1809_s10  ;;  %v758_v26 = vld [vmem:[#allocation2 + $0x1a] ss:$2 sm:$0xff] }
  0xed   : > { %v1509_v61 = vpop.f32.mrf.mxu0  ;;  %v726_v31 = vld [vmem:[#allocation2 + $0x18] ss:$2 sm:$0xff] }
  0xee   : > { %657 = vst.msk [vmem:[#allocation2 + $0x91] sm:$0xff] %vm590_vm2, %v568_v59  ;;  %v566_v63 = vmax.f32 %v464_v60, 0.0  ;;  %v475_v0 = vadd.f32 %v1509_v61, %v2005_v23 }
  0xef   : > { %v466_v2 = vpop.f32.mrf.mxu0 }
  0xf0   : > { %655 = vst.msk [vmem:[#allocation2 + $0x79] sm:$0xff] %vm590_vm2, %v566_v63  ;;  %v569_v3 = vmax.f32 %v475_v0, 0.0  ;;  %v467_v4 = vadd.f32 %v2005_v23, %v466_v2  ;;  %1586 = vrot.lane.b32.xlu0 %v1585_v1, %s1810_s13 }
  0xf1   : > { %v1512_v7 = vpop.f32.mrf.mxu0  ;;  %v808_v8 = vld [vmem:[#allocation2 + $0x62] ss:$2 sm:$0xff]  ;;  %v792_v9 = vld [vmem:[#allocation2 + $0x61] ss:$2 sm:$0xff] }
  0xf2   : > { %v776_v10 = vld [vmem:[#allocation2 + $0x60] ss:$2 sm:$0xff]  ;;  %658 = vst.msk [vmem:[#allocation2 + $0x99] sm:$0xff] %vm590_vm2, %v569_v3  ;;  %v567_v11 = vmax.f32 %v467_v4, 0.0  ;;  %v488_v12 = vadd.f32 %v1512_v7, %v2005_v23  ;;  %v1108_v13 = vpack.c.bf16 %v808_v8, %v806_v5  ;;  %v1595_v14 = vpack.i.bf16 %v792_v9, %v790_v6  ;;  %v699_v51 = vld [vmem:[#allocation2 + $0x61] ss:$2 sm:$0xff] }
  0xf3   : > { %v479_v17 = vpop.f32.mrf.mxu0  ;;  %v1590_v18 = vpack.i.bf16 %v776_v10, %v774_v15  ;;  %v760_v19 = vld [vmem:[#allocation2 + $0x4a] ss:$2 sm:$0xff]  ;;  %v744_v36 = vld [vmem:[#allocation2 + $0x49] ss:$2 sm:$0xff] }
  0xf4   : > { %656 = vst.msk [vmem:[#allocation2 + $0x81] sm:$0xff] %vm590_vm2, %v567_v11  ;;  %v572_v21 = vmax.f32 %v488_v12, 0.0  ;;  %v480_v22 = vadd.f32 %v2005_v23, %v479_v17  ;;  %1468 = vmatprep.mubr.msk.bf16.mxu1 %vm590_vm2, %v1108_v13  ;;  %1596 = vrot.lane.b32.xlu0 %v1595_v14, %s1811_s16  ;;  %v728_v24 = vld [vmem:[#allocation2 + $0x48] ss:$2 sm:$0xff]  ;;  %v1610_v30 = vpack.i.bf16 %v760_v19, %v758_v26 }
  0xf5   : > { %1591 = vrot.lane.b32.xlu1 %v1590_v18, %s1812_s17  ;;  %v1513_v25 = vpop.f32.mrf.mxu0  ;;  %v1600_v33 = vpack.i.bf16 %v728_v24, %v726_v31  ;;  %v715_v38 = vld [vmem:[#allocation2 + $0x62] ss:$2 sm:$0xff]  ;;  %v1605_v44 = vpack.i.bf16 %v744_v36, %v742_v42 }
  0xf6   : > { %661 = vst.msk [vmem:[#allocation2 + $0xc1] sm:$0xff] %vm590_vm2, %v572_v21  ;;  %v570_v28 = vmax.f32 %v480_v22, 0.0  ;;  %v491_v29 = vadd.f32 %v1513_v25, %v2005_v23 }
  0xf7   : > { %v482_v32 = vpop.f32.mrf.mxu0 }
  0xf8   : > { %659 = vst.msk [vmem:[#allocation2 + $0xa9] sm:$0xff] %vm590_vm2, %v570_v28  ;;  %v573_v34 = vmax.f32 %v491_v29, 0.0  ;;  %v483_v35 = vadd.f32 %v2005_v23, %v482_v32  ;;  %1611 = vrot.lane.b32.xlu0 %v1610_v30, %s1813_s26 }
  0xf9   : > { %1601 = vrot.lane.b32.xlu1 %v1600_v33, %s1814_s30  ;;  %v1516_v37 = vpop.f32.mrf.mxu0  ;;  %v717_v39 = vld [vmem:[#allocation2 + $0x92] ss:$2 sm:$0xff]  ;;  %v701_v47 = vld [vmem:[#allocation2 + $0x91] ss:$2 sm:$0xff] }
  0xfa   : > { %662 = vst.msk [vmem:[#allocation2 + $0xc9] sm:$0xff] %vm590_vm2, %v573_v34  ;;  %v571_v20 = vmax.f32 %v483_v35, 0.0  ;;  %v504_v40 = vadd.f32 %v1516_v37, %v2005_v23  ;;  %v1620_v41 = vpack.i.bf16 %v717_v39, %v715_v38  ;;  %v1615_v53 = vpack.i.bf16 %v701_v47, %v699_v51  ;;  %v778_v56 = vld [vmem:[#allocation2 + $0x90] ss:$2 sm:$0xff]  ;;  %v794_v59 = vld [vmem:[#allocation2 + $0x91] ss:$2 sm:$0xff] }
  0xfb   : > { %v495_v43 = vpop.f32.mrf.mxu0  ;;  %v746_v7 = vld [vmem:[#allocation2 + $0x79] ss:$2 sm:$0xff]  ;;  %v730_v11 = vld [vmem:[#allocation2 + $0x78] ss:$2 sm:$0xff] }
  0xfc   : > { %660 = vst.msk [vmem:[#allocation2 + $0xb1] sm:$0xff] %vm590_vm2, %v571_v20  ;;  %v576_v45 = vmax.f32 %v504_v40, 0.0  ;;  %v496_v46 = vadd.f32 %v2005_v23, %v495_v43  ;;  %1621 = vrot.lane.b32.xlu0 %v1620_v41, %s1810_s13  ;;  %v762_v25 = vld [vmem:[#allocation2 + $0x7a] ss:$2 sm:$0xff] }
  0xfd   : > { %1606 = vrot.lane.b32.xlu1 %v1605_v44, %s1815_s6  ;;  %v1517_v48 = vpop.f32.mrf.mxu0 }
  0xfe   : > { %665 = vst.msk [vmem:[#allocation2 + $0xf1] sm:$0xff] %vm590_vm2, %v576_v45  ;;  %v574_v49 = vmax.f32 %v496_v46, 0.0  ;;  %v507_v50 = vadd.f32 %v1517_v48, %v2005_v23 }
  0xff   : > { %v498_v52 = vpop.f32.mrf.mxu0 }
 0x100   : > { %663 = vst.msk [vmem:[#allocation2 + $0xd9] sm:$0xff] %vm590_vm2, %v574_v49  ;;  %v577_v54 = vmax.f32 %v507_v50, 0.0  ;;  %v499_v55 = vadd.f32 %v2005_v23, %v498_v52 }
 0x101   : > { %1616 = vrot.lane.b32.xlu1 %v1615_v53, %s1809_s10  ;;  %v1520_v57 = vpop.f32.mrf.mxu0  ;;  %v780_v58 = vld [vmem:[#allocation2 + $0xc0] ss:$2 sm:$0xff]  ;;  %v796_v60 = vld [vmem:[#allocation2 + $0xc1] ss:$2 sm:$0xff] }
 0x102   : > { %666 = vst.msk [vmem:[#allocation2 + $0xf9] sm:$0xff] %vm590_vm2, %v577_v54  ;;  %v575_v61 = vmax.f32 %v499_v55, 0.0  ;;  %v520_v62 = vadd.f32 %v1520_v57, %v2005_v23  ;;  %v1625_v63 = vpack.i.bf16 %v780_v58, %v778_v56  ;;  %v1630_v0 = vpack.i.bf16 %v796_v60, %v794_v59  ;;  %v703_v18 = vld [vmem:[#allocation2 + $0xc1] ss:$2 sm:$0xff]  ;;  %v719_v34 = vld [vmem:[#allocation2 + $0xc2] ss:$2 sm:$0xff] }
 0x103   : > { %v511_v1 = vpop.f32.mrf.mxu0  ;;  %v748_v2 = vld [vmem:[#allocation2 + $0xa9] ss:$2 sm:$0xff]  ;;  %v732_v5 = vld [vmem:[#allocation2 + $0xa8] ss:$2 sm:$0xff] }
 0x104   : > { %664 = vst.msk [vmem:[#allocation2 + $0xe1] sm:$0xff] %vm590_vm2, %v575_v61  ;;  %v580_v3 = vmax.f32 %v520_v62, 0.0  ;;  %v512_v4 = vadd.f32 %v2005_v23, %v511_v1  ;;  %1626 = vrot.lane.b32.xlu0 %v1625_v63, %s1812_s17  ;;  %v1640_v10 = vpack.i.bf16 %v748_v2, %v746_v7  ;;  %v1635_v13 = vpack.i.bf16 %v732_v5, %v730_v11  ;;  %v764_v16 = vld [vmem:[#allocation2 + $0xaa] ss:$2 sm:$0xff] }
 0x105   : > { %1631 = vrot.lane.b32.xlu1 %v1630_v0, %s1811_s16  ;;  %v1521_v6 = vpop.f32.mrf.mxu0  ;;  %v1645_v27 = vpack.i.bf16 %v764_v16, %v762_v25 }
 0x106   : > { %669 = vst.msk [vmem:[#allocation2 + $0x121] sm:$0xff] %vm590_vm2, %v580_v3  ;;  %v578_v8 = vmax.f32 %v512_v4, 0.0  ;;  %v523_v9 = vadd.f32 %v1521_v6, %v2005_v23 }
 0x107   : > { %v514_v12 = vpop.f32.mrf.mxu0 }
 0x108   : > { %667 = vst.msk [vmem:[#allocation2 + $0x109] sm:$0xff] %vm590_vm2, %v578_v8  ;;  %v581_v14 = vmax.f32 %v523_v9, 0.0  ;;  %v515_v15 = vadd.f32 %v2005_v23, %v514_v12  ;;  %1641 = vrot.lane.b32.xlu0 %v1640_v10, %s1815_s6 }
 0x109   : > { %1636 = vrot.lane.b32.xlu1 %v1635_v13, %s1814_s30  ;;  %v1524_v17 = vpop.f32.mrf.mxu0  ;;  %v705_v19 = vld [vmem:[#allocation2 + $0xf1] ss:$2 sm:$0xff]  ;;  %v721_v30 = vld [vmem:[#allocation2 + $0xf2] ss:$2 sm:$0xff] }
 0x10a   : > { %670 = vst.msk [vmem:[#allocation2 + $0x129] sm:$0xff] %vm590_vm2, %v581_v14  ;;  %v579_v21 = vmax.f32 %v515_v15, 0.0  ;;  %v536_v22 = vadd.f32 %v1524_v17, %v2005_v23  ;;  %v1650_v24 = vpack.i.bf16 %v705_v19, %v703_v18  ;;  %v1655_v36 = vpack.i.bf16 %v721_v30, %v719_v34  ;;  %v798_v39 = vld [vmem:[#allocation2 + $0xf1] ss:$2 sm:$0xff]  ;;  %v782_v41 = vld [vmem:[#allocation2 + $0xf0] ss:$2 sm:$0xff] }
 0x10b   : > { %v527_v26 = vpop.f32.mrf.mxu0  ;;  %v734_v53 = vld [vmem:[#allocation2 + $0xd8] ss:$2 sm:$0xff]  ;;  %v750_v57 = vld [vmem:[#allocation2 + $0xd9] ss:$2 sm:$0xff] }
 0x10c   : > { %668 = vst.msk [vmem:[#allocation2 + $0x111] sm:$0xff] %vm590_vm2, %v579_v21  ;;  %v584_v28 = vmax.f32 %v536_v22, 0.0  ;;  %v528_v29 = vadd.f32 %v2005_v23, %v527_v26  ;;  %1651 = vrot.lane.b32.xlu0 %v1650_v24, %s1809_s10  ;;  %v766_v63 = vld [vmem:[#allocation2 + $0xda] ss:$2 sm:$0xff] }
 0x10d   : > { %1646 = vrot.lane.b32.xlu1 %v1645_v27, %s1813_s26  ;;  %v1525_v31 = vpop.f32.mrf.mxu0 }
 0x10e   : > { %673 = vst.msk [vmem:[#allocation2 + $0x151] sm:$0xff] %vm590_vm2, %v584_v28  ;;  %v582_v32 = vmax.f32 %v528_v29, 0.0  ;;  %v539_v33 = vadd.f32 %v1525_v31, %v2005_v23  ;;  %v679_v31 = vld [vmem:[#allocation2] ss:$2 sm:$0xff] }
 0x10f   : > { %v530_v35 = vpop.f32.mrf.mxu0 }
 0x110   : > { %671 = vst.msk [vmem:[#allocation2 + $0x139] sm:$0xff] %vm590_vm2, %v582_v32  ;;  %v585_v37 = vmax.f32 %v539_v33, 0.0  ;;  %v531_v38 = vadd.f32 %v2005_v23, %v530_v35 }
 0x111   : > { %1656 = vrot.lane.b32.xlu1 %v1655_v36, %s1810_s13  ;;  %v1528_v20 = vpop.f32.mrf.mxu0  ;;  %v800_v40 = vld [vmem:[#allocation2 + $0x121] ss:$2 sm:$0xff]  ;;  %v784_v42 = vld [vmem:[#allocation2 + $0x120] ss:$2 sm:$0xff] }
 0x112   : > { %674 = vst.msk [vmem:[#allocation2 + $0x159] sm:$0xff] %vm590_vm2, %v585_v37  ;;  %v583_v43 = vmax.f32 %v531_v38, 0.0  ;;  %v552_v44 = vadd.f32 %v1528_v20, %v2005_v23  ;;  %v1665_v45 = vpack.i.bf16 %v800_v40, %v798_v39  ;;  %v1660_v46 = vpack.i.bf16 %v784_v42, %v782_v41  ;;  %v707_v0 = vld [vmem:[#allocation2 + $0x121] ss:$2 sm:$0xff]  ;;  %v681_v37 = vld [vmem:[#allocation2 + $0x30] ss:$2 sm:$0xff] }
 0x113   : > { %v543_v47 = vpop.f32.mrf.mxu0  ;;  %v736_v48 = vld [vmem:[#allocation2 + $0x108] ss:$2 sm:$0xff]  ;;  %v752_v51 = vld [vmem:[#allocation2 + $0x109] ss:$2 sm:$0xff] }
 0x114   : > { %672 = vst.msk [vmem:[#allocation2 + $0x141] sm:$0xff] %vm590_vm2, %v583_v43  ;;  %v588_v49 = vmax.f32 %v552_v44, 0.0  ;;  %v544_v50 = vadd.f32 %v2005_v23, %v543_v47  ;;  %1666 = vrot.lane.b32.xlu0 %v1665_v45, %s1811_s16  ;;  %v1670_v56 = vpack.i.bf16 %v736_v48, %v734_v53  ;;  %v1675_v59 = vpack.i.bf16 %v752_v51, %v750_v57  ;;  %v768_v60 = vld [vmem:[#allocation2 + $0x10a] ss:$2 sm:$0xff] }
 0x115   : > { %1661 = vrot.lane.b32.xlu1 %v1660_v46, %s1812_s17  ;;  %v1529_v52 = vpop.f32.mrf.mxu0  ;;  %v1680_v3 = vpack.i.bf16 %v768_v60, %v766_v63  ;;  %v812_v60 = vld [vmem:[#allocation2 + $0xc2] ss:$2 sm:$0xff] }
 0x116   : > { %677 = vst.msk [vmem:[#allocation2 + $0x181] sm:$0xff] %vm590_vm2, %v588_v49  ;;  %v586_v54 = vmax.f32 %v544_v50, 0.0  ;;  %v555_v55 = vadd.f32 %v1529_v52, %v2005_v23 }
 0x117   : > { %v546_v58 = vpop.f32.mrf.mxu0 }
 0x118   : > { %675 = vst.msk [vmem:[#allocation2 + $0x169] sm:$0xff] %vm590_vm2, %v586_v54  ;;  %v589_v61 = vmax.f32 %v555_v55, 0.0  ;;  %v547_v62 = vadd.f32 %v2005_v23, %v546_v58  ;;  %1671 = vrot.lane.b32.xlu0 %v1670_v56, %s1814_s30  ;;  %v723_v23 = vld [vmem:[#allocation2 + $0x122] ss:$2 sm:$0xff] }
 0x119   : > { %1676 = vrot.lane.b32.xlu1 %v1675_v59, %s1815_s6  ;;  %v709_v1 = vld [vmem:[#allocation2 + $0x151] ss:$2 sm:$0xff]  ;;  %v725_v5 = vld [vmem:[#allocation2 + $0x152] ss:$2 sm:$0xff] }
 0x11a   : > { %678 = vst.msk [vmem:[#allocation2 + $0x189] sm:$0xff] %vm590_vm2, %v589_v61  ;;  %v587_v2 = vmax.f32 %v547_v62, 0.0  ;;  %v1685_v4 = vpack.i.bf16 %v709_v1, %v707_v0  ;;  %v1690_v6 = vpack.i.bf16 %v725_v5, %v723_v23  ;;  %v786_v15 = vld [vmem:[#allocation2 + $0x150] ss:$2 sm:$0xff]  ;;  %v802_v21 = vld [vmem:[#allocation2 + $0x151] ss:$2 sm:$0xff] }
 0x11b   : > { %v754_v7 = vld [vmem:[#allocation2 + $0x139] ss:$2 sm:$0xff]  ;;  %v738_v9 = vld [vmem:[#allocation2 + $0x138] ss:$2 sm:$0xff] }
 0x11c   : > { %676 = vst.msk [vmem:[#allocation2 + $0x171] sm:$0xff] %vm590_vm2, %v587_v2  ;;  %1681 = vrot.lane.b32.xlu0 %v1680_v3, %s1813_s26  ;;  %v770_v16 = vld [vmem:[#allocation2 + $0x13a] ss:$2 sm:$0xff] }
 0x11d   : > { %1686 = vrot.lane.b32.xlu1 %v1685_v4, %s1809_s10  ;;  %v810_v3 = vld [vmem:[#allocation2 + $0x92] ss:$2 sm:$0xff]  ;;  %s1422_s10 = sshll.u32 %s215_s7, 5 }
 0x11e   : > { %v1110_v5 = vpack.c.bf16 %v812_v60, %v810_v3  ;;  %v683_v23 = vld [vmem:[#allocation2 + $0x60] ss:$2 sm:$0xff]  ;;  %s2188_s11 = scalar_lea.vmem [#allocation3], %s1422_s10 }
 0x120   : > { %1691 = vrot.lane.b32.xlu0 %v1690_v6, %s1810_s13  ;;  %v685_v6 = vld [vmem:[#allocation2 + $0x90] ss:$2 sm:$0xff]  ;;  %s1310_s13 = sshll.u32 %s2188_s11, 4  ;;  %s2211_s13 = int_to_ptr.vmem [resolvable:$true] %s1310_s13 }
 0x121   : > { %v788_v13 = vld [vmem:[#allocation2 + $0x180] ss:$2 sm:$0xff]  ;;  %v804_v19 = vld [vmem:[#allocation2 + $0x181] ss:$2 sm:$0xff]  ;;  %p1752_p0 = scmp.lt.s32.totalorder %s2211_s13, %s1750_s25 }
 0x122   : > { %v1710_v17 = vpack.i.bf16 %v788_v13, %v786_v15  ;;  %v1715_v22 = vpack.i.bf16 %v804_v19, %v802_v21 }
 0x123   : > { %v756_v8 = vld [vmem:[#allocation2 + $0x169] ss:$2 sm:$0xff]  ;;  %v740_v10 = vld [vmem:[#allocation2 + $0x168] ss:$2 sm:$0xff] }
 0x124   : > { %v1700_v11 = vpack.i.bf16 %v756_v8, %v754_v7  ;;  %v1695_v12 = vpack.i.bf16 %v740_v10, %v738_v9  ;;  %v772_v14 = vld [vmem:[#allocation2 + $0x16a] ss:$2 sm:$0xff] }
 0x125   : > { %v1705_v18 = vpack.i.bf16 %v772_v14, %v770_v16 }
 0x126   : > { %1701 = vrot.lane.b32.xlu0 %v1700_v11, %s1815_s6  ;;  %1696 = vrot.lane.b32.xlu1 %v1695_v12, %s1814_s30 }
 0x12a   : > { %1711 = vrot.lane.b32.xlu0 %v1710_v17, %s1812_s17  ;;  %1706 = vrot.lane.b32.xlu1 %v1705_v18, %s1813_s26  ;;  %s1745_s17 = scalar_lea.vmem %s2211_s13, 512  ;;  %s1751_s26 = scalar_lea.vmem %s1750_s25, 1024 }
 0x12b   : > { %p1746_p11 = scmp.ne.s32.totalorder %s2211_s13, %s1745_s17  ;;  %p1753_p1 = scmp.lt.s32.totalorder %s1751_s26, %s1745_s17 }
 0x12d   : > { %p1747_p12 = pnand %p1746_p11, %p1886_p5  ;;  %p1754_p2 = por %p1753_p1, %p1752_p0 }
 0x12e   : > { %1716 = vrot.lane.b32.xlu1 %v1715_v22, %s1811_s16  ;;  %s2209_s16 = scalar_lea.hbm %s2264_s5, %s1478_s12 }
 0x12f   : > { %p1748_p13 = pneg %p1747_p12 }
 0x131   : > { %p1755_p3 = pnand %p1754_p2, %p1748_p13 }
 0x15e   : > { %v1582_v24 = vpop.permute.xlu0 %1581 }
 0x15f   : > { %v1584_v28 = vunpack.i.h.bf16 %v1582_v24  ;;  %v1583_v29 = vunpack.i.l.bf16 %v1582_v24 }
 0x161   : > { %v1045_v38 = vsel %vm590_vm2, %v679_v31, %v1583_v29  ;;  %v1046_v39 = vsel %vm590_vm2, %v681_v37, %v1584_v28 }
 0x162   : > { %v1587_v25 = vpop.permute.xlu0 %1586 }
 0x163   : > { %v1589_v32 = vunpack.i.h.bf16 %v1587_v25  ;;  %v1588_v33 = vunpack.i.l.bf16 %v1587_v25 }
 0x165   : > { %v1054_v40 = vsel %vm1053_vm4, %v1045_v38, %v1588_v33  ;;  %v1055_v41 = vsel %vm1053_vm4, %v1046_v39, %v1589_v32  ;;  %v816_v38 = vld [vmem:[#allocation2 + $0x122] ss:$2 sm:$0xff] }
 0x166   : > { %v1597_v26 = vpop.permute.xlu0 %1596 }
 0x167   : > { %v1592_v27 = vpop.permute.xlu1 %1591  ;;  %v1599_v53 = vunpack.i.h.bf16 %v1597_v26  ;;  %v1598_v54 = vunpack.i.l.bf16 %v1597_v26 }
 0x168   : > { %v1594_v48 = vunpack.i.h.bf16 %v1592_v27  ;;  %v1593_v49 = vunpack.i.l.bf16 %v1592_v27 }
 0x16a   : > { %v1612_v34 = vpop.permute.xlu0 %1611 }
 0x16b   : > { %v1602_v30 = vpop.permute.xlu1 %1601  ;;  %v1614_v44 = vunpack.i.h.bf16 %v1612_v34  ;;  %v1613_v45 = vunpack.i.l.bf16 %v1612_v34 }
 0x16c   : > { %v1604_v35 = vunpack.i.h.bf16 %v1602_v30  ;;  %v1603_v36 = vunpack.i.l.bf16 %v1602_v30 }
 0x16e   : > { %v1064_v46 = vsel %vm1062_vm5, %v1055_v41, %v1604_v35  ;;  %v1063_v47 = vsel %vm1062_vm5, %v1054_v40, %v1603_v36  ;;  %v1622_v50 = vpop.permute.xlu0 %1621  ;;  %v814_v41 = vld [vmem:[#allocation2 + $0xf2] ss:$2 sm:$0xff] }
 0x16f   : > { %v1607_v20 = vpop.permute.xlu1 %1606  ;;  %v1624_v10 = vunpack.i.h.bf16 %v1622_v50  ;;  %v1623_v11 = vunpack.i.l.bf16 %v1622_v50  ;;  %v689_v50 = vld [vmem:[#allocation2 + $0xf0] ss:$2 sm:$0xff] }
 0x170   : > { %v1609_v42 = vunpack.i.h.bf16 %v1607_v20  ;;  %v1608_v43 = vunpack.i.l.bf16 %v1607_v20 }
 0x172   : > { %v1072_v51 = vsel %vm1071_vm6, %v1063_v47, %v1608_v43  ;;  %v1073_v52 = vsel %vm1071_vm6, %v1064_v46, %v1609_v42  ;;  %v1112_v43 = vpack.c.bf16 %v816_v38, %v814_v41 }
 0x173   : > { %v1081_v55 = vsel %vm1080_vm7, %v1072_v51, %v1613_v45  ;;  %v1082_v56 = vsel %vm1080_vm7, %v1073_v52, %v1614_v44  ;;  %v1617_v57 = vpop.permute.xlu1 %1616 }
 0x174   : > { %v1090_v58 = vsel %vm1089_vm8, %v1081_v55, %v1593_v49  ;;  %v1091_v59 = vsel %vm1089_vm8, %v1082_v56, %v1594_v48  ;;  %v1619_v63 = vunpack.i.h.bf16 %v1617_v57  ;;  %v1618_v0 = vunpack.i.l.bf16 %v1617_v57  ;;  %v687_v49 = vld [vmem:[#allocation2 + $0xc0] ss:$2 sm:$0xff] }
 0x175   : > { %v1099_v61 = vsel %vm1098_vm9, %v1090_v58, %v1598_v54  ;;  %v1100_v62 = vsel %vm1098_vm9, %v1091_v59, %v1599_v53 }
 0x176   : > { %v1627_v1 = vpop.permute.xlu0 %1626  ;;  %v1107_v2 = vpack.c.bf16 %v1100_v62, %v1099_v61  ;;  %v1048_v7 = vsel %vm590_vm2, %v685_v6, %v1619_v63  ;;  %v1047_v8 = vsel %vm590_vm2, %v683_v23, %v1618_v0 }
 0x177   : > { %v1632_v4 = vpop.permute.xlu1 %1631  ;;  %v1056_v17 = vsel %vm1053_vm4, %v1047_v8, %v1623_v11  ;;  %v1057_v18 = vsel %vm1053_vm4, %v1048_v7, %v1624_v10  ;;  %v1629_v26 = vunpack.i.h.bf16 %v1627_v1  ;;  %v1628_v27 = vunpack.i.l.bf16 %v1627_v1 }
 0x178   : > { %1239 = vmatmul.mubr.bf16.vlgmr.msra.gmra.mxu1 %v1107_v2  ;;  %v1634_v30 = vunpack.i.h.bf16 %v1632_v4  ;;  %v1633_v31 = vunpack.i.l.bf16 %v1632_v4 }
 0x179   : > { %1469 = vmatprep.mubr.msk.bf16.mxu1 %vm590_vm2, %v1110_v5 }
 0x17a   : > { %v1642_v9 = vpop.permute.xlu0 %1641 }
 0x17b   : > { %v1637_v12 = vpop.permute.xlu1 %1636  ;;  %v1644_v15 = vunpack.i.h.bf16 %v1642_v9  ;;  %v1643_v16 = vunpack.i.l.bf16 %v1642_v9 }
 0x17c   : > { %v1639_v13 = vunpack.i.h.bf16 %v1637_v12  ;;  %v1638_v14 = vunpack.i.l.bf16 %v1637_v12  ;;  %v820_v12 = vld [vmem:[#allocation2 + $0x182] ss:$2 sm:$0xff] }
 0x17e   : > { %v1065_v19 = vsel %vm1062_vm5, %v1056_v17, %v1638_v14  ;;  %v1066_v21 = vsel %vm1062_vm5, %v1057_v18, %v1639_v13  ;;  %v1652_v32 = vpop.permute.xlu0 %1651  ;;  %v818_v17 = vld [vmem:[#allocation2 + $0x152] ss:$2 sm:$0xff] }
 0x17f   : > { %v1647_v22 = vpop.permute.xlu1 %1646  ;;  %v1074_v28 = vsel %vm1071_vm6, %v1065_v19, %v1643_v16  ;;  %v1075_v29 = vsel %vm1071_vm6, %v1066_v21, %v1644_v15  ;;  %v1654_v44 = vunpack.i.h.bf16 %v1652_v32  ;;  %v1653_v45 = vunpack.i.l.bf16 %v1652_v32 }
 0x180   : > { %v1649_v24 = vunpack.i.h.bf16 %v1647_v22  ;;  %v1648_v25 = vunpack.i.l.bf16 %v1647_v22  ;;  %v1114_v21 = vpack.c.bf16 %v820_v12, %v818_v17 }
 0x181   : > { %v1050_v52 = vsel %vm590_vm2, %v689_v50, %v1654_v44  ;;  %v1049_v53 = vsel %vm590_vm2, %v687_v49, %v1653_v45 }
 0x182   : > { %v1083_v33 = vsel %vm1080_vm7, %v1074_v28, %v1648_v25  ;;  %v1084_v34 = vsel %vm1080_vm7, %v1075_v29, %v1649_v24  ;;  %v691_v25 = vld [vmem:[#allocation2 + $0x120] ss:$2 sm:$0xff] }
 0x183   : > { %v1657_v35 = vpop.permute.xlu1 %1656  ;;  %v1092_v36 = vsel %vm1089_vm8, %v1083_v33, %v1628_v27  ;;  %v1093_v37 = vsel %vm1089_vm8, %v1084_v34, %v1629_v26  ;;  %v693_v26 = vld [vmem:[#allocation2 + $0x150] ss:$2 sm:$0xff] }
 0x184   : > { %v1101_v39 = vsel %vm1098_vm9, %v1092_v36, %v1633_v31  ;;  %v1102_v20 = vsel %vm1098_vm9, %v1093_v37, %v1634_v30  ;;  %v1659_v47 = vunpack.i.h.bf16 %v1657_v35  ;;  %v1658_v48 = vunpack.i.l.bf16 %v1657_v35 }
 0x185   : > { %v1109_v40 = vpack.c.bf16 %v1102_v20, %v1101_v39 }
 0x186   : > { %v1667_v42 = vpop.permute.xlu0 %1666  ;;  %v1059_v57 = vsel %vm1053_vm4, %v1050_v52, %v1659_v47  ;;  %v1058_v58 = vsel %vm1053_vm4, %v1049_v53, %v1658_v48 }
 0x187   : > { %v1662_v46 = vpop.permute.xlu1 %1661  ;;  %1247 = vmatmul.mubr.bf16.gmra.mxu1 %v1109_v40  ;;  %v1669_v23 = vunpack.i.h.bf16 %v1667_v42  ;;  %v1668_v6 = vunpack.i.l.bf16 %v1667_v42 }
 0x188   : > { %1470 = vmatprep.mubr.msk.bf16.mxu1 %vm590_vm2, %v1112_v43  ;;  %v1664_v2 = vunpack.i.h.bf16 %v1662_v46  ;;  %v1663_v3 = vunpack.i.l.bf16 %v1662_v46 }
 0x18a   : > { %v1672_v51 = vpop.permute.xlu0 %1671 }
 0x18b   : > { %v1674_v54 = vunpack.i.h.bf16 %v1672_v51  ;;  %v1673_v55 = vunpack.i.l.bf16 %v1672_v51  ;;  %v1677_v56 = vpop.permute.xlu1 %1676 }
 0x18c   : > { %v1679_v59 = vunpack.i.h.bf16 %v1677_v56  ;;  %v1678_v60 = vunpack.i.l.bf16 %v1677_v56  ;;  %v1458_v56 = vld [vmem:[%s2263_s4] ss:$0 sm:$0xff] }
 0x18d   : > { %v1067_v61 = vsel %vm1062_vm5, %v1058_v58, %v1673_v55  ;;  %v1068_v62 = vsel %vm1062_vm5, %v1059_v57, %v1674_v54 }
 0x18e   : > { %v1682_v63 = vpop.permute.xlu0 %1681  ;;  %v1076_v4 = vsel %vm1071_vm6, %v1067_v61, %v1678_v60  ;;  %v1077_v5 = vsel %vm1071_vm6, %v1068_v62, %v1679_v59 }
 0x18f   : > { %v1684_v0 = vunpack.i.h.bf16 %v1682_v63  ;;  %v1683_v1 = vunpack.i.l.bf16 %v1682_v63  ;;  %v1687_v9 = vpop.permute.xlu1 %1686 }
 0x190   : > { %v1689_v18 = vunpack.i.h.bf16 %v1687_v9  ;;  %v1688_v19 = vunpack.i.l.bf16 %v1687_v9 }
 0x191   : > { %v1085_v7 = vsel %vm1080_vm7, %v1076_v4, %v1683_v1  ;;  %v1086_v8 = vsel %vm1080_vm7, %v1077_v5, %v1684_v0 }
 0x192   : > { %v1094_v10 = vsel %vm1089_vm8, %v1085_v7, %v1663_v3  ;;  %v1095_v11 = vsel %vm1089_vm8, %v1086_v8, %v1664_v2  ;;  %v1692_v13 = vpop.permute.xlu0 %1691  ;;  %v1052_v29 = vsel %vm590_vm2, %v693_v26, %v1689_v18  ;;  %v1051_v30 = vsel %vm590_vm2, %v691_v25, %v1688_v19 }
 0x193   : > { %v1103_v14 = vsel %vm1098_vm9, %v1094_v10, %v1668_v6  ;;  %v1104_v15 = vsel %vm1098_vm9, %v1095_v11, %v1669_v23  ;;  %v1694_v22 = vunpack.i.h.bf16 %v1692_v13  ;;  %v1693_v24 = vunpack.i.l.bf16 %v1692_v13 }
 0x194   : > { %v1111_v16 = vpack.c.bf16 %v1104_v15, %v1103_v14 }
 0x195   : > { %v1060_v33 = vsel %vm1053_vm4, %v1051_v30, %v1693_v24  ;;  %v1061_v34 = vsel %vm1053_vm4, %v1052_v29, %v1694_v22 }
 0x196   : > { %1255 = vmatmul.mubr.bf16.gmra.mxu1 %v1111_v16 }
 0x197   : > { %1471 = vmatprep.mubr.msk.bf16.mxu1 %vm590_vm2, %v1114_v21 }
 0x198   : > { %v1702_v27 = vpop.permute.xlu0 %1701  ;;  %v1697_v28 = vpop.permute.xlu1 %1696 }
 0x199   : > { %v1699_v31 = vunpack.i.h.bf16 %v1697_v28  ;;  %v1698_v32 = vunpack.i.l.bf16 %v1697_v28  ;;  %v1704_v35 = vunpack.i.h.bf16 %v1702_v27  ;;  %v1703_v36 = vunpack.i.l.bf16 %v1702_v27 }
 0x19b   : > { %v1069_v37 = vsel %vm1062_vm5, %v1060_v33, %v1698_v32  ;;  %v1070_v38 = vsel %vm1062_vm5, %v1061_v34, %v1699_v31 }
 0x19c   : > { %v1712_v39 = vpop.permute.xlu0 %1711  ;;  %v1707_v20 = vpop.permute.xlu1 %1706  ;;  %v1078_v44 = vsel %vm1071_vm6, %v1069_v37, %v1703_v36  ;;  %v1079_v45 = vsel %vm1071_vm6, %v1070_v38, %v1704_v35 }
 0x19d   : > { %v1709_v40 = vunpack.i.h.bf16 %v1707_v20  ;;  %v1708_v41 = vunpack.i.l.bf16 %v1707_v20  ;;  %v1714_v42 = vunpack.i.h.bf16 %v1712_v39  ;;  %v1713_v43 = vunpack.i.l.bf16 %v1712_v39 }
 0x19f   : > { %v1087_v46 = vsel %vm1080_vm7, %v1078_v44, %v1708_v41  ;;  %v1088_v47 = vsel %vm1080_vm7, %v1079_v45, %v1709_v40 }
 0x1a0   : > { %v1717_v48 = vpop.permute.xlu1 %1716  ;;  %v1096_v51 = vsel %vm1089_vm8, %v1087_v46, %v1713_v43  ;;  %v1097_v52 = vsel %vm1089_vm8, %v1088_v47, %v1714_v42 }
 0x1a1   : > { %v1719_v49 = vunpack.i.h.bf16 %v1717_v48  ;;  %v1718_v50 = vunpack.i.l.bf16 %v1717_v48 }
 0x1a3   : > { %v1105_v53 = vsel %vm1098_vm9, %v1096_v51, %v1718_v50  ;;  %v1106_v54 = vsel %vm1098_vm9, %v1097_v52, %v1719_v49 }
 0x1a4   : > { %v1113_v55 = vpack.c.bf16 %v1106_v54, %v1105_v53 }
 0x1a6   : > { %1263 = vmatmul.mubr.bf16.gmra.mxu1 %v1113_v55 }
 0x238   : > { %v1240_v57 = vpop.f32.mrf.mxu1 }
 0x239   : > { %v1241_v58 = vadd.f32 %v1458_v56, %v1240_v57 }
 0x23a   : > { %v1242_v59 = vpop.f32.mrf.mxu1 }
 0x23b   : > { %v1271_v60 = vmax.f32 %v1241_v58, 0.0 }
 0x23c   : > { %v1243_v61 = vpop.f32.mrf.mxu1 }
 0x23d   : > { %v1279_v62 = vpack.c.bf16 %v1271_v60, %v1271_v60  ;;  %v1244_v63 = vadd.f32 %v1458_v56, %v1243_v61 }
 0x23e   : > { %v1245_v0 = vpop.f32.mrf.mxu1 }
 0x23f   : > { %1288 = vst.msk [vmem:[%s2188_s11] sm:$0xf] %vm1287_vm10, %v1279_v62  ;;  %v1272_v1 = vmax.f32 %v1244_v63, 0.0 }
 0x241   : > { %v1280_v2 = vpack.c.bf16 %v1272_v1, %v1272_v1 }
 0x243   : > { %1289 = vst.msk [vmem:[%s2188_s11 + $0x4] sm:$0xf] %vm1287_vm10, %v1280_v2 }
 0x247   : > { %v1248_v3 = vpop.f32.mrf.mxu1 }
 0x248   : > { %v1249_v4 = vadd.f32 %v1458_v56, %v1248_v3 }
 0x249   : > { %v1250_v5 = vpop.f32.mrf.mxu1 }
 0x24a   : > { %v1273_v23 = vmax.f32 %v1249_v4, 0.0 }
 0x24b   : > { %v1251_v6 = vpop.f32.mrf.mxu1 }
 0x24c   : > { %v1281_v7 = vpack.c.bf16 %v1273_v23, %v1273_v23  ;;  %v1252_v8 = vadd.f32 %v1458_v56, %v1251_v6 }
 0x24d   : > { %v1253_v9 = vpop.f32.mrf.mxu1 }
 0x24e   : > { %1290 = vst.msk [vmem:[%s2188_s11 + $0x8] sm:$0xf] %vm1287_vm10, %v1281_v7  ;;  %v1274_v10 = vmax.f32 %v1252_v8, 0.0 }
 0x250   : > { %v1282_v11 = vpack.c.bf16 %v1274_v10, %v1274_v10 }
 0x252   : > { %1291 = vst.msk [vmem:[%s2188_s11 + $0xc] sm:$0xf] %vm1287_vm10, %v1282_v11 }
 0x256   : > { %v1256_v12 = vpop.f32.mrf.mxu1 }
 0x257   : > { %v1257_v13 = vadd.f32 %v1458_v56, %v1256_v12 }
 0x258   : > { %v1258_v14 = vpop.f32.mrf.mxu1 }
 0x259   : > { %v1275_v15 = vmax.f32 %v1257_v13, 0.0 }
 0x25a   : > { %v1259_v16 = vpop.f32.mrf.mxu1 }
 0x25b   : > { %v1283_v17 = vpack.c.bf16 %v1275_v15, %v1275_v15  ;;  %v1260_v18 = vadd.f32 %v1458_v56, %v1259_v16 }
 0x25c   : > { %v1261_v19 = vpop.f32.mrf.mxu1 }
 0x25d   : > { %1292 = vst.msk [vmem:[%s2188_s11 + $0x10] sm:$0xf] %vm1287_vm10, %v1283_v17  ;;  %v1276_v21 = vmax.f32 %v1260_v18, 0.0 }
 0x25f   : > { %v1284_v22 = vpack.c.bf16 %v1276_v21, %v1276_v21 }
 0x261   : > { %1293 = vst.msk [vmem:[%s2188_s11 + $0x14] sm:$0xf] %vm1287_vm10, %v1284_v22 }
 0x266   : > { %v1264_v24 = vpop.f32.mrf.mxu1 }
 0x267   : > { %v1265_v25 = vadd.f32 %v1458_v56, %v1264_v24 }
 0x268   : > { %v1266_v26 = vpop.f32.mrf.mxu1 }
 0x269   : > { %v1277_v27 = vmax.f32 %v1265_v25, 0.0 }
 0x26a   : > { %v1267_v28 = vpop.f32.mrf.mxu1 }
 0x26b   : > { %v1285_v29 = vpack.c.bf16 %v1277_v27, %v1277_v27  ;;  %v1268_v30 = vadd.f32 %v1458_v56, %v1267_v28 }
 0x26c   : > { %v1269_v31 = vpop.f32.mrf.mxu1 }
 0x26d   : > { %1294 = vst.msk [vmem:[%s2188_s11 + $0x18] sm:$0xf] %vm1287_vm10, %v1285_v29  ;;  %v1278_v32 = vmax.f32 %v1268_v30, 0.0 }
 0x26f   : > { %v1286_v33 = vpack.c.bf16 %v1278_v32, %v1278_v32 }
 0x271   : > { %1295 = vst.msk [vmem:[%s2188_s11 + $0x1c] sm:$0xf] %vm1287_vm10, %v1286_v33 }
 0x272   : > { %1758 = shalt.err (!%p1755_p3)
}
 0x273   : > { %s1759_s30 = scalar_lea.hbm %s2209_s16, 512  ;;  %s1763_s9 = scalar_lea.hbm %s2264_s5, 1024 }
 0x274   : > { %p1760_p4 = scmp.ne.s32.totalorder %s2209_s16, %s1759_s30  ;;  %p1764_p9 = scmp.lt.s32.totalorder %s2209_s16, %s2264_s5 }
 0x275   : > { %p1765_p10 = scmp.lt.s32.totalorder %s1763_s9, %s1759_s30 }
 0x276   : > { %p1761_p7 = pnand %p1760_p4, %p1886_p5 }
 0x277   : > { %p1766_p11 = por %p1765_p10, %p1764_p9 }
 0x278   : > { %p1762_p8 = pneg %p1761_p7 }
 0x27a   : > { %p1767_p12 = pnand %p1766_p11, %p1762_p8 }
 0x27c   : > { %1770 = shalt.err (!%p1767_p12)
}
 0x27d   : > { %s1817_s12 = smov 4  }
 0x27e   : > { %1531 = dma.vmem_to_hbm [thread:$0]  (%p1886_p5), %s2211_s13, 512, %s2209_s16, %s2217_s22, %s1815_s6, %s1815_s6, %s1817_s12  }
 0x27f PF: > { %p1537_p13 = scmp.ge.s32.totalorder %s1805_s21, 2  ;;  %s1325_s14 = sand.u32 1, %s1793_s18  }
 0x280   : > { %s1326_s15 = scalar_lea.sflag [#allocation4], %s1325_s14 }
 0x281   : > { %p1534_p0 = pnand %p1537_p13, %p1890_p6 }
 0x283   : > { %p1535_p1 = pneg %p1534_p0 }
 0x285   : > { %1788 = dma.done.wait (%p1535_p1), %s1326_s15, 512  }
 0x286   : > { %1790 = vsyncadd (%p1535_p1), %s1326_s15, 4294966784  ;;  %p15_p2 = scmp.ge.s32.totalorder %s1873_s24, 4   ;;  %s2267_s18 = smov %s1797_s19 }
 0x287   : > { %s2268_s19 = smov %s1801_s20  ;;  %s2269_s20 = smov %s1884_s27 }
 0x288   : > { %s2270_s21 = smov %s1873_s24  ;;  %17 = sbr.rel (!%p15_p2) target bundleno = 3 (0x3), region = 146 }
 0x28d   :  { %1331 = vsyncpa [#allocation4], 1 }
 0x28e   :  { %1333 = vsyncpa [#allocation4 + $0x1], 1 }

</bundles_post_ra>
